<compile_context>
chip_gen: v6e
topology: v6e:2x2x1
jax: 0.10.0
libtpu: 0.0.40
codegen_flags: <defaults>
</compile_context>

<pallas_src>
import functools
import math

import jax
import jax.numpy as jnp
from jax.experimental import pallas as pl
from jax.experimental.pallas import tpu as pltpu


def _layer_norm(z, gamma_b, beta_b, eps=1e-5):
    mu = jnp.mean(z, axis=-1, keepdims=True)
    c = z - mu
    var = jnp.mean(c * c, axis=-1, keepdims=True)
    return c * jax.lax.rsqrt(var + eps) * gamma_b + beta_b


def encoder_block_kernel(x_tile_ref, x_full_ref, mask_ref,
                         wq_ref, bq_ref, wkv_ref, bkv_ref,
                         wo_ref, bo_ref, gamma_ref, beta_ref,
                         w1_ref, b1_ref, w2_ref, b2_ref,
                         o_ref,
                         k_cache, v_cache,
                         *, num_heads, query_dim, key_dim, value_dim):
    f32 = jnp.float32
    bf16 = jnp.bfloat16
    H, Dq, Dk, Dv = num_heads, query_dim, key_dim, value_dim

    TQ = x_tile_ref.shape[1]
    S = x_full_ref.shape[1]
    E = x_tile_ref.shape[2]

    # ---- K/V projection: once per batch (query-tile 0), cached in VMEM -----
    # One wide matmul (S, E) @ (E, H*(Dk+Dv)); no per-head activation copies.
    @pl.when(pl.program_id(1) == 0)
    def _():
        xf = x_full_ref[0].astype(bf16)                               # (S, E)
        kv = jnp.dot(xf, wkv_ref[...],
                     preferred_element_type=f32) + bkv_ref[...]       # (S, H*(Dk+Dv))
        kv = kv.astype(bf16)
        k = kv[:, :H * Dk].reshape(S, H, Dk)
        v = kv[:, H * Dk:].reshape(S, H, Dv)
        k_cache[...] = jnp.transpose(k, (1, 0, 2))                    # (H, S, Dk)
        v_cache[...] = jnp.transpose(v, (1, 0, 2))                    # (H, S, Dv)

    # ---- Q projection: one fused lane-dense matmul (scale folded into wq) --
    x = x_tile_ref[0]                                                 # (TQ, E) f32
    q = jnp.dot(x.astype(bf16), wq_ref[...],
                preferred_element_type=f32) + bq_ref[...]             # (TQ, H*Dq)
    qh = jnp.transpose(q.reshape(TQ, H, Dq), (1, 0, 2)).astype(bf16)  # (H, TQ, Dq)

    # ---- Attention scores + additive mask bias (built once, (TQ, S) f32) ---
    s = jnp.einsum('hqd,hkd->hqk', qh, k_cache[...],
                   preferred_element_type=f32)                        # (H, TQ, S)
    bias = jnp.where(mask_ref[0].astype(f32) > 0.0,
                     jnp.float32(0.0), jnp.float32(-1e9))             # (TQ, S)
    s = s + bias[None]

    m = jnp.max(s, axis=-1, keepdims=True)
    p = jnp.exp(s - m)
    denom = jnp.sum(p, axis=-1, keepdims=True)
    p = p * pl.reciprocal(denom, approx=True)                         # EUP slot

    oh = jnp.einsum('hqk,hkd->hqd', p.astype(bf16), v_cache[...],
                    preferred_element_type=f32)                       # (H, TQ, Dv)

    # ---- Output projection: one matmul on head-concatenated activations ----
    o_cat = jnp.transpose(oh, (1, 0, 2)).reshape(TQ, H * Dv).astype(bf16)
    attn_out = jnp.dot(o_cat, wo_ref[...],
                       preferred_element_type=f32) + bo_ref[...]      # (TQ, E)

    # ---- Shared LayerNorm (same gamma/beta used twice, as in the module) ---
    gamma_b = jnp.broadcast_to(gamma_ref[...], (TQ, E))               # hoisted once
    beta_b = jnp.broadcast_to(beta_ref[...], (TQ, E))

    n1 = _layer_norm(x + attn_out, gamma_b, beta_b)

    # ---- Feed forward: Linear(E,4E) -> ReLU -> Linear(4E,E) ----------------
    h1 = jnp.dot(n1.astype(bf16), w1_ref[...],
                 preferred_element_type=f32) + b1_ref[...]
    h1 = jnp.maximum(h1, 0.0)
    ff = jnp.dot(h1.astype(bf16), w2_ref[...],
                 preferred_element_type=f32) + b2_ref[...]

    o_ref[0] = _layer_norm(n1 + ff, gamma_b, beta_b)


def _vmem_limit_bytes(S, E, TQ, H, Dq, Dk, Dv):
    """Rough residency estimate used to size the scoped-VMEM cap."""
    bf, f32 = 2, 4
    # Double-buffered per-step blocks (x tile, mask tile, out tile, x full).
    per_step = 2 * (TQ * E * f32 + TQ * S * 1 + TQ * E * f32 + S * E * f32)
    # Single-buffered constants (pl.Buffered(1)).
    consts = (bf * (E * H * Dq + E * H * (Dk + Dv) + H * Dv * E
                    + E * 4 * E + 4 * E * E)
              + f32 * (H * Dq + H * (Dk + Dv) + 8 * E))
    # Persistent K/V caches.
    caches = bf * H * S * (Dk + Dv)
    # Dominant in-kernel temporaries: scores + probs (f32), FFN hidden, heads.
    temps = (2 * H * TQ * S * f32 + TQ * 4 * E * f32
             + 2 * H * TQ * (Dq + Dv) * f32)
    est = per_step + consts + caches + temps
    # Generous headroom, but comfortably under v7x's 64 MiB physical VMEM.
    return int(min(max(est * 2, 32 << 20), 60 << 20))


def encoder_block(x, mask, params, *, num_heads, query_dim, key_dim, value_dim,
                  q_tile=128):
    B, S, E = x.shape
    H = num_heads
    assert query_dim == key_dim, "q/k head dims must match for dot-product attention"
    TQ = min(q_tile, S)
    assert S % TQ == 0, "seq_len must be a multiple of the query tile"

    (wq, bq, wk, bk, wv, bv, wo, bo, gamma, beta, w1, b1, w2, b2) = params
    bf16 = jnp.bfloat16
    f32 = jnp.float32

    # Fold the 1/sqrt(key_dim) softmax scale into the Q projection.
    scale = 1.0 / math.sqrt(float(key_dim))
    wq_s = (wq * scale).astype(bf16)                       # (E, H*Dq)
    bq_s = (bq * scale).astype(f32)                        # (1, H*Dq)
    # Fuse K and V projections into one wide matmul.
    wkv = jnp.concatenate([wk, wv], axis=1).astype(bf16)   # (E, H*(Dk+Dv))
    bkv = jnp.concatenate([bk, bv], axis=1).astype(f32)    # (1, H*(Dk+Dv))
    wo_b = wo.astype(bf16)                                 # (H*Dv, E)
    w1_b = w1.astype(bf16)                                 # (E, 4E)
    w2_b = w2.astype(bf16)                                 # (4E, E)

    # 1 byte/elem of mask HBM traffic instead of 4.
    mask_i8 = (mask != 0).astype(jnp.int8)

    # Constant weights/biases never change across the grid -> single-buffer.
    def _const_spec(a):
        n = a.ndim
        return pl.BlockSpec(a.shape, lambda b, qi, _n=n: (0,) * _n,
                            pipeline_mode=pl.Buffered(1))

    kernel = functools.partial(
        encoder_block_kernel,
        num_heads=H, query_dim=query_dim, key_dim=key_dim, value_dim=value_dim)

    vmem_limit = _vmem_limit_bytes(S, E, TQ, H, query_dim, key_dim, value_dim)

    grid = (B, S // TQ)
    return pl.pallas_call(
        kernel,
        out_shape=jax.ShapeDtypeStruct((B, S, E), jnp.float32),
        grid_spec=pltpu.PrefetchScalarGridSpec(
            num_scalar_prefetch=0,
            grid=grid,
            in_specs=[
                pl.BlockSpec((1, TQ, E), lambda b, qi: (b, qi, 0)),  # x query tile
                pl.BlockSpec((1, S, E), lambda b, qi: (b, 0, 0)),    # x full (K/V)
                pl.BlockSpec((1, TQ, S), lambda b, qi: (b, qi, 0)),  # mask tile
                _const_spec(wq_s), _const_spec(bq_s),
                _const_spec(wkv), _const_spec(bkv),
                _const_spec(wo_b), _const_spec(bo),
                _const_spec(gamma), _const_spec(beta),
                _const_spec(w1_b), _const_spec(b1),
                _const_spec(w2_b), _const_spec(b2),
            ],
            out_specs=pl.BlockSpec((1, TQ, E), lambda b, qi: (b, qi, 0)),
            scratch_shapes=[
                pltpu.VMEM((H, S, key_dim), jnp.bfloat16),    # cached K (head-major)
                pltpu.VMEM((H, S, value_dim), jnp.bfloat16),  # cached V (head-major)
            ],
        ),
        compiler_params=pltpu.CompilerParams(
            dimension_semantics=("parallel", "arbitrary"),
            vmem_limit_bytes=vmem_limit),
    )(x, x, mask_i8, wq_s, bq_s, wkv, bkv, wo_b, bo,
      gamma, beta, w1_b, b1, w2_b, b2)


def encoder_block_ref(x, mask, params, *, num_heads, query_dim, key_dim,
                      value_dim):
    """Pure-JAX f32 reference (same math as the fused kernel)."""
    (wq, bq, wk, bk, wv, bv, wo, bo, gamma, beta, w1, b1, w2, b2) = params
    B, S, E = x.shape
    H = num_heads
    q = (x @ wq + bq).reshape(B, S, H, query_dim).transpose(0, 2, 1, 3)
    k = (x @ wk + bk).reshape(B, S, H, key_dim).transpose(0, 2, 1, 3)
    v = (x @ wv + bv).reshape(B, S, H, value_dim).transpose(0, 2, 1, 3)
    s = jnp.einsum('bhqd,bhkd->bhqk', q, k) / math.sqrt(float(key_dim))
    s = jnp.where(mask[:, None] > 0, s, -1e9)
    p = jax.nn.softmax(s, axis=-1)
    o = jnp.einsum('bhqk,bhkd->bhqd', p, v)
    o = o.transpose(0, 2, 1, 3).reshape(B, S, H * value_dim)
    attn = o @ wo + bo

    def ln(z):
        mu = z.mean(-1, keepdims=True)
        var = ((z - mu) ** 2).mean(-1, keepdims=True)
        return (z - mu) * jax.lax.rsqrt(var + 1e-5) * gamma + beta

    n1 = ln(x + attn)
    ff = jax.nn.relu(n1 @ w1 + b1) @ w2 + b2
    return ln(n1 + ff)


def init_params(key, embed_size, num_heads, query_dim, key_dim, value_dim):
    """Deterministic PyTorch-Linear-style init (uniform +/- 1/sqrt(fan_in))."""
    def linear(k, fan_in, fan_out):
        k1, k2 = jax.random.split(k)
        bound = 1.0 / math.sqrt(fan_in)
        w = jax.random.uniform(k1, (fan_in, fan_out), jnp.float32, -bound, bound)
        b = jax.random.uniform(k2, (1, fan_out), jnp.float32, -bound, bound)
        return w, b

    keys = jax.random.split(key, 6)
    wq, bq = linear(keys[0], embed_size, num_heads * query_dim)
    wk, bk = linear(keys[1], embed_size, num_heads * key_dim)
    wv, bv = linear(keys[2], embed_size, num_heads * value_dim)
    wo, bo = linear(keys[3], num_heads * value_dim, embed_size)
    gamma = jnp.ones((1, embed_size), jnp.float32)
    beta = jnp.zeros((1, embed_size), jnp.float32)
    w1, b1 = linear(keys[4], embed_size, 4 * embed_size)
    w2, b2 = linear(keys[5], 4 * embed_size, embed_size)
    return (wq, bq, wk, bk, wv, bv, wo, bo, gamma, beta, w1, b1, w2, b2)


if __name__ == "__main__":
    # Small shapes consistent with the module's forward (correctness-only;
    # benchmark with E, S multiples of 128 and head dims in {64, 128}).
    B, S, E = 2, 8, 32
    num_heads = 2
    query_dim = key_dim = value_dim = E // num_heads   # 16

    root = jax.random.PRNGKey(0)
    k_x, k_p = jax.random.split(root)

    x = jax.random.normal(k_x, (B, S, E), jnp.float32)
    # Causal mask (nonzero = attend, 0 = masked), broadcast per batch.
    causal = jnp.tril(jnp.ones((S, S), jnp.float32))
    mask = jnp.broadcast_to(causal, (B, S, S))

    params = init_params(k_p, E, num_heads, query_dim, key_dim, value_dim)

    out = encoder_block(x, mask, params,
                        num_heads=num_heads, query_dim=query_dim,
                        key_dim=key_dim, value_dim=value_dim)
    jax.block_until_ready(out)

    ref = encoder_block_ref(x, mask, params,
                            num_heads=num_heads, query_dim=query_dim,
                            key_dim=key_dim, value_dim=value_dim)

    assert out.shape == (B, S, E)
    assert bool(jnp.all(jnp.isfinite(out)))
    max_err = float(jnp.max(jnp.abs(out - ref)))
    # bf16 MXU operands + approx reciprocal vs. f32 reference: loose bound.
    assert max_err < 0.2, f"kernel deviates from f32 reference: {max_err}"
    print("KERNEL_OK")
</pallas_src>

<mosaic_0001>
module attributes {stable_mosaic.version = 11 : i64} {
  func.func @encoder_block_kernel(%arg0: i32, %arg1: i32, %arg2: memref<1x8x32xf32, #tpu.memory_space<vmem>>, %arg3: memref<1x8x32xf32, #tpu.memory_space<vmem>>, %arg4: memref<1x8x8xi8, #tpu.memory_space<vmem>>, %arg5: memref<32x32xbf16, #tpu.memory_space<vmem>>, %arg6: memref<1x32xf32, #tpu.memory_space<vmem>>, %arg7: memref<32x64xbf16, #tpu.memory_space<vmem>>, %arg8: memref<1x64xf32, #tpu.memory_space<vmem>>, %arg9: memref<32x32xbf16, #tpu.memory_space<vmem>>, %arg10: memref<1x32xf32, #tpu.memory_space<vmem>>, %arg11: memref<1x32xf32, #tpu.memory_space<vmem>>, %arg12: memref<1x32xf32, #tpu.memory_space<vmem>>, %arg13: memref<32x128xbf16, #tpu.memory_space<vmem>>, %arg14: memref<1x128xf32, #tpu.memory_space<vmem>>, %arg15: memref<128x32xbf16, #tpu.memory_space<vmem>>, %arg16: memref<1x32xf32, #tpu.memory_space<vmem>>, %arg17: memref<1x8x32xf32, #tpu.memory_space<vmem>>, %arg18: memref<2x8x16xbf16, #tpu.memory_space<vmem>>, %arg19: memref<2x8x16xbf16, #tpu.memory_space<vmem>>) attributes {dimension_semantics = [#tpu.dimension_semantics<parallel>, #tpu.dimension_semantics<arbitrary>], iteration_bounds = array<i64: 2, 1>, scalar_prefetch = 0 : i64, scratch_operands = 2 : i64, tpu.core_type = #tpu.core_type<tc>, window_params = [{transform_indices = @transform_0, window_bounds = array<i64: 1, 8, 32>}, {transform_indices = @transform_1, window_bounds = array<i64: 1, 8, 32>}, {transform_indices = @transform_2, window_bounds = array<i64: 1, 8, 8>}, {pipeline_mode = #tpu.pipeline_mode<synchronous>, transform_indices = @transform_3, window_bounds = array<i64: 32, 32>}, {pipeline_mode = #tpu.pipeline_mode<synchronous>, transform_indices = @transform_4, window_bounds = array<i64: 1, 32>}, {pipeline_mode = #tpu.pipeline_mode<synchronous>, transform_indices = @transform_5, window_bounds = array<i64: 32, 64>}, {pipeline_mode = #tpu.pipeline_mode<synchronous>, transform_indices = @transform_6, window_bounds = array<i64: 1, 64>}, {pipeline_mode = #tpu.pipeline_mode<synchronous>, transform_indices = @transform_7, window_bounds = array<i64: 32, 32>}, {pipeline_mode = #tpu.pipeline_mode<synchronous>, transform_indices = @transform_8, window_bounds = array<i64: 1, 32>}, {pipeline_mode = #tpu.pipeline_mode<synchronous>, transform_indices = @transform_9, window_bounds = array<i64: 1, 32>}, {pipeline_mode = #tpu.pipeline_mode<synchronous>, transform_indices = @transform_10, window_bounds = array<i64: 1, 32>}, {pipeline_mode = #tpu.pipeline_mode<synchronous>, transform_indices = @transform_11, window_bounds = array<i64: 32, 128>}, {pipeline_mode = #tpu.pipeline_mode<synchronous>, transform_indices = @transform_12, window_bounds = array<i64: 1, 128>}, {pipeline_mode = #tpu.pipeline_mode<synchronous>, transform_indices = @transform_13, window_bounds = array<i64: 128, 32>}, {pipeline_mode = #tpu.pipeline_mode<synchronous>, transform_indices = @transform_14, window_bounds = array<i64: 1, 32>}, {transform_indices = @transform_15, window_bounds = array<i64: 1, 8, 32>}]} {
    %c0_i32 = arith.constant 0 : i32
    %0 = arith.cmpi eq, %arg1, %c0_i32 : i32
    %1 = arith.extui %0 : i1 to i32
    %c0_i32_0 = arith.constant 0 : i32
    %2 = arith.cmpi ne, %1, %c0_i32_0 : i32
    scf.if %2 {
      %c0_56 = arith.constant 0 : index
      %c0_57 = arith.constant 0 : index
      %c0_58 = arith.constant 0 : index
      %109 = vector.load %arg3[%c0_56, %c0_57, %c0_58] : memref<1x8x32xf32, #tpu.memory_space<vmem>>, vector<1x8x32xf32>
      %110 = vector.shape_cast %109 : vector<1x8x32xf32> to vector<8x32xf32>
      %111 = arith.truncf %110 : vector<8x32xf32> to vector<8x32xbf16>
      %c0_59 = arith.constant 0 : index
      %c0_60 = arith.constant 0 : index
      %112 = vector.load %arg7[%c0_59, %c0_60] : memref<32x64xbf16, #tpu.memory_space<vmem>>, vector<32x64xbf16>
      %cst_61 = arith.constant dense<0.000000e+00> : vector<8x64xf32>
      %113 = tpu.matmul %111, %112, %cst_61 {dimension_numbers = #tpu.dot_dimension_numbers<[1], [0], [0], [1], [0, 0, 1, 1], [], []>} : vector<8x32xbf16>, vector<32x64xbf16>, vector<8x64xf32> -> vector<8x64xf32>
      %c0_62 = arith.constant 0 : index
      %c0_63 = arith.constant 0 : index
      %114 = vector.load %arg8[%c0_62, %c0_63] : memref<1x64xf32, #tpu.memory_space<vmem>>, vector<1x64xf32>
      %115 = vector.broadcast %114 : vector<1x64xf32> to vector<8x64xf32>
      %116 = arith.addf %113, %115 : vector<8x64xf32>
      %117 = arith.truncf %116 : vector<8x64xf32> to vector<8x64xbf16>
      %118 = vector.extract_strided_slice %117 {offsets = [0, 0], sizes = [8, 32], strides = [1, 1]} : vector<8x64xbf16> to vector<8x32xbf16>
      %119 = vector.shape_cast %118 : vector<8x32xbf16> to vector<8x2x16xbf16>
      %120 = vector.extract_strided_slice %117 {offsets = [0, 32], sizes = [8, 32], strides = [1, 1]} : vector<8x64xbf16> to vector<8x32xbf16>
      %121 = vector.shape_cast %120 : vector<8x32xbf16> to vector<8x2x16xbf16>
      %122 = tpu.transpose %119, [1, 0, 2] : vector<8x2x16xbf16> -> vector<2x8x16xbf16>
      %c0_64 = arith.constant 0 : index
      %c0_65 = arith.constant 0 : index
      %c0_66 = arith.constant 0 : index
      %123 = vector.load %arg18[%c0_64, %c0_65, %c0_66] : memref<2x8x16xbf16, #tpu.memory_space<vmem>>, vector<2x8x16xbf16>
      tpu.vector_store %arg18[%c0_64, %c0_65, %c0_66], %122 {strides = array<i32>} : memref<2x8x16xbf16, #tpu.memory_space<vmem>>, vector<2x8x16xbf16>,
      %124 = tpu.transpose %121, [1, 0, 2] : vector<8x2x16xbf16> -> vector<2x8x16xbf16>
      %c0_67 = arith.constant 0 : index
      %c0_68 = arith.constant 0 : index
      %c0_69 = arith.constant 0 : index
      %125 = vector.load %arg19[%c0_67, %c0_68, %c0_69] : memref<2x8x16xbf16, #tpu.memory_space<vmem>>, vector<2x8x16xbf16>
      tpu.vector_store %arg19[%c0_67, %c0_68, %c0_69], %124 {strides = array<i32>} : memref<2x8x16xbf16, #tpu.memory_space<vmem>>, vector<2x8x16xbf16>,
    } else {
    }
    %c0 = arith.constant 0 : index
    %c0_1 = arith.constant 0 : index
    %c0_2 = arith.constant 0 : index
    %3 = vector.load %arg2[%c0, %c0_1, %c0_2] : memref<1x8x32xf32, #tpu.memory_space<vmem>>, vector<1x8x32xf32>
    %4 = vector.shape_cast %3 : vector<1x8x32xf32> to vector<8x32xf32>
    %5 = arith.truncf %4 : vector<8x32xf32> to vector<8x32xbf16>
    %c0_3 = arith.constant 0 : index
    %c0_4 = arith.constant 0 : index
    %6 = vector.load %arg5[%c0_3, %c0_4] : memref<32x32xbf16, #tpu.memory_space<vmem>>, vector<32x32xbf16>
    %cst = arith.constant dense<0.000000e+00> : vector<8x32xf32>
    %7 = tpu.matmul %5, %6, %cst {dimension_numbers = #tpu.dot_dimension_numbers<[1], [0], [0], [1], [0, 0, 1, 1], [], []>} : vector<8x32xbf16>, vector<32x32xbf16>, vector<8x32xf32> -> vector<8x32xf32>
    %c0_5 = arith.constant 0 : index
    %c0_6 = arith.constant 0 : index
    %8 = vector.load %arg6[%c0_5, %c0_6] : memref<1x32xf32, #tpu.memory_space<vmem>>, vector<1x32xf32>
    %9 = vector.broadcast %8 : vector<1x32xf32> to vector<8x32xf32>
    %10 = arith.addf %7, %9 : vector<8x32xf32>
    %11 = vector.shape_cast %10 : vector<8x32xf32> to vector<8x2x16xf32>
    %12 = tpu.transpose %11, [1, 0, 2] : vector<8x2x16xf32> -> vector<2x8x16xf32>
    %13 = arith.truncf %12 : vector<2x8x16xf32> to vector<2x8x16xbf16>
    %c0_7 = arith.constant 0 : index
    %c0_8 = arith.constant 0 : index
    %c0_9 = arith.constant 0 : index
    %14 = vector.load %arg18[%c0_7, %c0_8, %c0_9] : memref<2x8x16xbf16, #tpu.memory_space<vmem>>, vector<2x8x16xbf16>
    "tpu.trace_start"() <{level = 10 : i32, message = "hqd,hkd->hqk"}> : () -> ()
    %cst_10 = arith.constant dense<0.000000e+00> : vector<2x8x8xf32>
    %15 = tpu.matmul %13, %14, %cst_10 {dimension_numbers = #tpu.dot_dimension_numbers<[2], [2], [1], [1], [0, 0, 0, 1, 1, 1], [0], [0]>} : vector<2x8x16xbf16>, vector<2x8x16xbf16>, vector<2x8x8xf32> -> vector<2x8x8xf32>
    "tpu.trace_stop"() : () -> ()
    %c0_11 = arith.constant 0 : index
    %c0_12 = arith.constant 0 : index
    %c0_13 = arith.constant 0 : index
    %16 = vector.load %arg4[%c0_11, %c0_12, %c0_13] : memref<1x8x8xi8, #tpu.memory_space<vmem>>, vector<1x8x8xi8>
    %17 = vector.shape_cast %16 : vector<1x8x8xi8> to vector<8x8xi8>
    %18 = arith.sitofp %17 : vector<8x8xi8> to vector<8x8xf32>
    %cst_14 = arith.constant 0.000000e+00 : f32
    %19 = vector.broadcast %cst_14 : f32 to vector<8x8xf32>
    %20 = arith.cmpf ogt, %18, %19 : vector<8x8xf32>
    %cst_15 = arith.constant 0.000000e+00 : f32
    %cst_16 = arith.constant -1.000000e+09 : f32
    %21 = vector.broadcast %cst_15 : f32 to vector<8x8xf32>
    %22 = vector.broadcast %cst_16 : f32 to vector<8x8xf32>
    %23 = arith.select %20, %21, %22 : vector<8x8xi1>, vector<8x8xf32>
    %24 = vector.shape_cast %23 : vector<8x8xf32> to vector<1x8x8xf32>
    %25 = vector.broadcast %24 : vector<1x8x8xf32> to vector<2x8x8xf32>
    %26 = arith.addf %15, %25 : vector<2x8x8xf32>
    %cst_17 = arith.constant dense<0xFF800000> : vector<2x8xf32>
    %27 = vector.multi_reduction <maximumf>, %26, %cst_17 [2] : vector<2x8x8xf32> to vector<2x8xf32>
    %28 = vector.shape_cast %27 : vector<2x8xf32> to vector<2x8x1xf32>
    %29 = vector.broadcast %28 : vector<2x8x1xf32> to vector<2x8x8xf32>
    %30 = arith.subf %26, %29 : vector<2x8x8xf32>
    %31 = math.exp %30 : vector<2x8x8xf32>
    %cst_18 = arith.constant dense<0.000000e+00> : vector<2x8xf32>
    %32 = vector.multi_reduction <add>, %31, %cst_18 [2] : vector<2x8x8xf32> to vector<2x8xf32>
    %33 = vector.shape_cast %32 : vector<2x8xf32> to vector<2x8x1xf32>
    %34 = tpu.reciprocal %33 {approx = true} : vector<2x8x1xf32> -> vector<2x8x1xf32>
    %35 = vector.broadcast %34 : vector<2x8x1xf32> to vector<2x8x8xf32>
    %36 = arith.mulf %31, %35 : vector<2x8x8xf32>
    %37 = arith.truncf %36 : vector<2x8x8xf32> to vector<2x8x8xbf16>
    %c0_19 = arith.constant 0 : index
    %c0_20 = arith.constant 0 : index
    %c0_21 = arith.constant 0 : index
    %38 = vector.load %arg19[%c0_19, %c0_20, %c0_21] : memref<2x8x16xbf16, #tpu.memory_space<vmem>>, vector<2x8x16xbf16>
    "tpu.trace_start"() <{level = 10 : i32, message = "hqk,hkd->hqd"}> : () -> ()
    %cst_22 = arith.constant dense<0.000000e+00> : vector<2x8x16xf32>
    %39 = tpu.matmul %37, %38, %cst_22 {dimension_numbers = #tpu.dot_dimension_numbers<[2], [1], [1], [2], [0, 0, 0, 1, 1, 2], [0], [0]>} : vector<2x8x8xbf16>, vector<2x8x16xbf16>, vector<2x8x16xf32> -> vector<2x8x16xf32>
    "tpu.trace_stop"() : () -> ()
    %40 = tpu.transpose %39, [1, 0, 2] : vector<2x8x16xf32> -> vector<8x2x16xf32>
    %41 = vector.shape_cast %40 : vector<8x2x16xf32> to vector<8x32xf32>
    %42 = arith.truncf %41 : vector<8x32xf32> to vector<8x32xbf16>
    %c0_23 = arith.constant 0 : index
    %c0_24 = arith.constant 0 : index
    %43 = vector.load %arg9[%c0_23, %c0_24] : memref<32x32xbf16, #tpu.memory_space<vmem>>, vector<32x32xbf16>
    %cst_25 = arith.constant dense<0.000000e+00> : vector<8x32xf32>
    %44 = tpu.matmul %42, %43, %cst_25 {dimension_numbers = #tpu.dot_dimension_numbers<[1], [0], [0], [1], [0, 0, 1, 1], [], []>} : vector<8x32xbf16>, vector<32x32xbf16>, vector<8x32xf32> -> vector<8x32xf32>
    %c0_26 = arith.constant 0 : index
    %c0_27 = arith.constant 0 : index
    %45 = vector.load %arg10[%c0_26, %c0_27] : memref<1x32xf32, #tpu.memory_space<vmem>>, vector<1x32xf32>
    %46 = vector.broadcast %45 : vector<1x32xf32> to vector<8x32xf32>
    %47 = arith.addf %44, %46 : vector<8x32xf32>
    %c0_28 = arith.constant 0 : index
    %c0_29 = arith.constant 0 : index
    %48 = vector.load %arg11[%c0_28, %c0_29] : memref<1x32xf32, #tpu.memory_space<vmem>>, vector<1x32xf32>
    %49 = vector.shape_cast %48 : vector<1x32xf32> to vector<1x32xf32>
    %50 = vector.broadcast %49 : vector<1x32xf32> to vector<8x32xf32>
    %c0_30 = arith.constant 0 : index
    %c0_31 = arith.constant 0 : index
    %51 = vector.load %arg12[%c0_30, %c0_31] : memref<1x32xf32, #tpu.memory_space<vmem>>, vector<1x32xf32>
    %52 = vector.shape_cast %51 : vector<1x32xf32> to vector<1x32xf32>
    %53 = vector.broadcast %52 : vector<1x32xf32> to vector<8x32xf32>
    %54 = arith.addf %4, %47 : vector<8x32xf32>
    %cst_32 = arith.constant dense<0.000000e+00> : vector<8xf32>
    %55 = vector.multi_reduction <add>, %54, %cst_32 [1] : vector<8x32xf32> to vector<8xf32>
    %56 = vector.shape_cast %55 : vector<8xf32> to vector<8x1xf32>
    %cst_33 = arith.constant 3.200000e+01 : f32
    %57 = vector.broadcast %cst_33 : f32 to vector<8x1xf32>
    %58 = arith.divf %56, %57 : vector<8x1xf32>
    %59 = vector.broadcast %58 : vector<8x1xf32> to vector<8x32xf32>
    %60 = arith.subf %54, %59 : vector<8x32xf32>
    %61 = arith.mulf %60, %60 : vector<8x32xf32>
    %cst_34 = arith.constant dense<0.000000e+00> : vector<8xf32>
    %62 = vector.multi_reduction <add>, %61, %cst_34 [1] : vector<8x32xf32> to vector<8xf32>
    %63 = vector.shape_cast %62 : vector<8xf32> to vector<8x1xf32>
    %cst_35 = arith.constant 3.200000e+01 : f32
    %64 = vector.broadcast %cst_35 : f32 to vector<8x1xf32>
    %65 = arith.divf %63, %64 : vector<8x1xf32>
    %cst_36 = arith.constant 9.99999974E-6 : f32
    %66 = vector.broadcast %cst_36 : f32 to vector<8x1xf32>
    %67 = arith.addf %65, %66 : vector<8x1xf32>
    %68 = math.rsqrt %67 : vector<8x1xf32>
    %69 = vector.broadcast %68 : vector<8x1xf32> to vector<8x32xf32>
    %70 = arith.mulf %60, %69 : vector<8x32xf32>
    %71 = arith.mulf %70, %50 : vector<8x32xf32>
    %72 = arith.addf %71, %53 : vector<8x32xf32>
    %73 = arith.truncf %72 : vector<8x32xf32> to vector<8x32xbf16>
    %c0_37 = arith.constant 0 : index
    %c0_38 = arith.constant 0 : index
    %74 = vector.load %arg13[%c0_37, %c0_38] : memref<32x128xbf16, #tpu.memory_space<vmem>>, vector<32x128xbf16>
    %cst_39 = arith.constant dense<0.000000e+00> : vector<8x128xf32>
    %75 = tpu.matmul %73, %74, %cst_39 {dimension_numbers = #tpu.dot_dimension_numbers<[1], [0], [0], [1], [0, 0, 1, 1], [], []>} : vector<8x32xbf16>, vector<32x128xbf16>, vector<8x128xf32> -> vector<8x128xf32>
    %c0_40 = arith.constant 0 : index
    %c0_41 = arith.constant 0 : index
    %76 = vector.load %arg14[%c0_40, %c0_41] : memref<1x128xf32, #tpu.memory_space<vmem>>, vector<1x128xf32>
    %77 = vector.broadcast %76 : vector<1x128xf32> to vector<8x128xf32>
    %78 = arith.addf %75, %77 : vector<8x128xf32>
    %cst_42 = arith.constant 0.000000e+00 : f32
    %79 = vector.broadcast %cst_42 : f32 to vector<8x128xf32>
    %80 = arith.maximumf %78, %79 : vector<8x128xf32>
    %81 = arith.truncf %80 : vector<8x128xf32> to vector<8x128xbf16>
    %c0_43 = arith.constant 0 : index
    %c0_44 = arith.constant 0 : index
    %82 = vector.load %arg15[%c0_43, %c0_44] : memref<128x32xbf16, #tpu.memory_space<vmem>>, vector<128x32xbf16>
    %cst_45 = arith.constant dense<0.000000e+00> : vector<8x32xf32>
    %83 = tpu.matmul %81, %82, %cst_45 {dimension_numbers = #tpu.dot_dimension_numbers<[1], [0], [0], [1], [0, 0, 1, 1], [], []>} : vector<8x128xbf16>, vector<128x32xbf16>, vector<8x32xf32> -> vector<8x32xf32>
    %c0_46 = arith.constant 0 : index
    %c0_47 = arith.constant 0 : index
    %84 = vector.load %arg16[%c0_46, %c0_47] : memref<1x32xf32, #tpu.memory_space<vmem>>, vector<1x32xf32>
    %85 = vector.broadcast %84 : vector<1x32xf32> to vector<8x32xf32>
    %86 = arith.addf %83, %85 : vector<8x32xf32>
    %87 = arith.addf %72, %86 : vector<8x32xf32>
    %cst_48 = arith.constant dense<0.000000e+00> : vector<8xf32>
    %88 = vector.multi_reduction <add>, %87, %cst_48 [1] : vector<8x32xf32> to vector<8xf32>
    %89 = vector.shape_cast %88 : vector<8xf32> to vector<8x1xf32>
    %cst_49 = arith.constant 3.200000e+01 : f32
    %90 = vector.broadcast %cst_49 : f32 to vector<8x1xf32>
    %91 = arith.divf %89, %90 : vector<8x1xf32>
    %92 = vector.broadcast %91 : vector<8x1xf32> to vector<8x32xf32>
    %93 = arith.subf %87, %92 : vector<8x32xf32>
    %94 = arith.mulf %93, %93 : vector<8x32xf32>
    %cst_50 = arith.constant dense<0.000000e+00> : vector<8xf32>
    %95 = vector.multi_reduction <add>, %94, %cst_50 [1] : vector<8x32xf32> to vector<8xf32>
    %96 = vector.shape_cast %95 : vector<8xf32> to vector<8x1xf32>
    %cst_51 = arith.constant 3.200000e+01 : f32
    %97 = vector.broadcast %cst_51 : f32 to vector<8x1xf32>
    %98 = arith.divf %96, %97 : vector<8x1xf32>
    %cst_52 = arith.constant 9.99999974E-6 : f32
    %99 = vector.broadcast %cst_52 : f32 to vector<8x1xf32>
    %100 = arith.addf %98, %99 : vector<8x1xf32>
    %101 = math.rsqrt %100 : vector<8x1xf32>
    %102 = vector.broadcast %101 : vector<8x1xf32> to vector<8x32xf32>
    %103 = arith.mulf %93, %102 : vector<8x32xf32>
    %104 = arith.mulf %103, %50 : vector<8x32xf32>
    %105 = arith.addf %104, %53 : vector<8x32xf32>
    %c0_53 = arith.constant 0 : index
    %c0_54 = arith.constant 0 : index
    %c0_55 = arith.constant 0 : index
    %106 = vector.load %arg17[%c0_53, %c0_54, %c0_55] : memref<1x8x32xf32, #tpu.memory_space<vmem>>, vector<1x8x32xf32>
    %107 = vector.shape_cast %106 : vector<1x8x32xf32> to vector<8x32xf32>
    %108 = vector.shape_cast %105 : vector<8x32xf32> to vector<1x8x32xf32>
    tpu.vector_store %arg17[%c0_53, %c0_54, %c0_55], %108 {strides = array<i32>} : memref<1x8x32xf32, #tpu.memory_space<vmem>>, vector<1x8x32xf32>,
    return
  }
  func.func @transform_0(%arg0: i32, %arg1: i32) -> (i32, i32, i32) {
    %c0_i32 = arith.constant 0 : i32
    %c0_i32_0 = arith.constant 0 : i32
    return %arg0, %arg1, %c0_i32 : i32, i32, i32
  }
  func.func @transform_1(%arg0: i32, %arg1: i32) -> (i32, i32, i32) {
    %c0_i32 = arith.constant 0 : i32
    %c0_i32_0 = arith.constant 0 : i32
    %c0_i32_1 = arith.constant 0 : i32
    return %arg0, %c0_i32, %c0_i32_0 : i32, i32, i32
  }
  func.func @transform_2(%arg0: i32, %arg1: i32) -> (i32, i32, i32) {
    %c0_i32 = arith.constant 0 : i32
    %c0_i32_0 = arith.constant 0 : i32
    return %arg0, %arg1, %c0_i32 : i32, i32, i32
  }
  func.func @transform_3(%arg0: i32, %arg1: i32) -> (i32, i32) {
    %c0_i32 = arith.constant 0 : i32
    %c0_i32_0 = arith.constant 0 : i32
    %c0_i32_1 = arith.constant 0 : i32
    return %c0_i32, %c0_i32_0 : i32, i32
  }
  func.func @transform_4(%arg0: i32, %arg1: i32) -> (i32, i32) {
    %c0_i32 = arith.constant 0 : i32
    %c0_i32_0 = arith.constant 0 : i32
    %c0_i32_1 = arith.constant 0 : i32
    return %c0_i32, %c0_i32_0 : i32, i32
  }
  func.func @transform_5(%arg0: i32, %arg1: i32) -> (i32, i32) {
    %c0_i32 = arith.constant 0 : i32
    %c0_i32_0 = arith.constant 0 : i32
    %c0_i32_1 = arith.constant 0 : i32
    return %c0_i32, %c0_i32_0 : i32, i32
  }
  func.func @transform_6(%arg0: i32, %arg1: i32) -> (i32, i32) {
    %c0_i32 = arith.constant 0 : i32
    %c0_i32_0 = arith.constant 0 : i32
    %c0_i32_1 = arith.constant 0 : i32
    return %c0_i32, %c0_i32_0 : i32, i32
  }
  func.func @transform_7(%arg0: i32, %arg1: i32) -> (i32, i32) {
    %c0_i32 = arith.constant 0 : i32
    %c0_i32_0 = arith.constant 0 : i32
    %c0_i32_1 = arith.constant 0 : i32
    return %c0_i32, %c0_i32_0 : i32, i32
  }
  func.func @transform_8(%arg0: i32, %arg1: i32) -> (i32, i32) {
    %c0_i32 = arith.constant 0 : i32
    %c0_i32_0 = arith.constant 0 : i32
    %c0_i32_1 = arith.constant 0 : i32
    return %c0_i32, %c0_i32_0 : i32, i32
  }
  func.func @transform_9(%arg0: i32, %arg1: i32) -> (i32, i32) {
    %c0_i32 = arith.constant 0 : i32
    %c0_i32_0 = arith.constant 0 : i32
    %c0_i32_1 = arith.constant 0 : i32
    return %c0_i32, %c0_i32_0 : i32, i32
  }
  func.func @transform_10(%arg0: i32, %arg1: i32) -> (i32, i32) {
    %c0_i32 = arith.constant 0 : i32
    %c0_i32_0 = arith.constant 0 : i32
    %c0_i32_1 = arith.constant 0 : i32
    return %c0_i32, %c0_i32_0 : i32, i32
  }
  func.func @transform_11(%arg0: i32, %arg1: i32) -> (i32, i32) {
    %c0_i32 = arith.constant 0 : i32
    %c0_i32_0 = arith.constant 0 : i32
    %c0_i32_1 = arith.constant 0 : i32
    return %c0_i32, %c0_i32_0 : i32, i32
  }
  func.func @transform_12(%arg0: i32, %arg1: i32) -> (i32, i32) {
    %c0_i32 = arith.constant 0 : i32
    %c0_i32_0 = arith.constant 0 : i32
    %c0_i32_1 = arith.constant 0 : i32
    return %c0_i32, %c0_i32_0 : i32, i32
  }
  func.func @transform_13(%arg0: i32, %arg1: i32) -> (i32, i32) {
    %c0_i32 = arith.constant 0 : i32
    %c0_i32_0 = arith.constant 0 : i32
    %c0_i32_1 = arith.constant 0 : i32
    return %c0_i32, %c0_i32_0 : i32, i32
  }
  func.func @transform_14(%arg0: i32, %arg1: i32) -> (i32, i32) {
    %c0_i32 = arith.constant 0 : i32
    %c0_i32_0 = arith.constant 0 : i32
    %c0_i32_1 = arith.constant 0 : i32
    return %c0_i32, %c0_i32_0 : i32, i32
  }
  func.func @transform_15(%arg0: i32, %arg1: i32) -> (i32, i32, i32) {
    %c0_i32 = arith.constant 0 : i32
    %c0_i32_0 = arith.constant 0 : i32
    return %arg0, %arg1, %c0_i32 : i32, i32, i32
  }
}

</mosaic_0001>

<bundles_post_ra>
// kernel: tpu_custom_call.1
= control target key start
LH: loop header
LB: loop body
LE: loop exit
PB: predicated region body
PF: predicated region fallthrough
CT: control target
= control target key end

     0   :  { %s3009_s0 = inlined_call_operand.vmem [shape: f32[2,8,32], index: 0, kind: input, shape index: {}]   ;;  %s3010_s1 = inlined_call_operand.vmem [shape: f32[2,8,32], index: 1, kind: input, shape index: {}]   ;;  %s3011_s2 = inlined_call_operand.hbm [shape: s8[2,8,8], index: 2, kind: input, shape index: {}]   ;;  %s3012_s3 = inlined_call_operand.vmem [shape: bf16[32,32], index: 3, kind: input, shape index: {}]   ;;  %s3013_s4 = inlined_call_operand.hbm [shape: f32[1,32], index: 4, kind: input, shape index: {}]   ;;  %s3014_s5 = inlined_call_operand.vmem [shape: bf16[32,64], index: 5, kind: input, shape index: {}]   ;;  %s3015_s6 = inlined_call_operand.hbm [shape: f32[1,64], index: 6, kind: input, shape index: {}]   ;;  %s3016_s7 = inlined_call_operand.vmem [shape: bf16[32,32], index: 7, kind: input, shape index: {}]   ;;  %s3017_s8 = inlined_call_operand.hbm [shape: f32[1,32], index: 8, kind: input, shape index: {}]   ;;  %s3018_s9 = inlined_call_operand.hbm [shape: f32[1,32], index: 9, kind: input, shape index: {}]   ;;  %s3019_s10 = inlined_call_operand.vmem [shape: f32[1,32], index: 10, kind: input, shape index: {}]   ;;  %s3020_s11 = inlined_call_operand.vmem [shape: bf16[32,128], index: 11, kind: input, shape index: {}]   ;;  %s3021_s12 = inlined_call_operand.vmem [shape: f32[1,128], index: 12, kind: input, shape index: {}]   ;;  %s3022_s13 = inlined_call_operand.vmem [shape: bf16[128,32], index: 13, kind: input, shape index: {}]   ;;  %s3023_s14 = inlined_call_operand.vmem [shape: f32[1,32], index: 14, kind: input, shape index: {}]   ;;  %s3024_s15 = inlined_call_operand.hbm [shape: f32[2,8,32], index: 15, kind: output, shape index: {}]  }
   0x1   :  { %3033 = sst [smem:[#allocation23_spill]] %s3013_s4 }
   0x2   :  { %3034 = sst [smem:[#allocation24_spill]] %s3015_s6 }
   0x3   :  { %3035 = sst [smem:[#allocation25_spill]] %s3017_s8 }
   0x4   :  { %3036 = sst [smem:[#allocation26_spill]] %s3018_s9 }
   0x5   :  { %3037 = sst [smem:[#allocation27_spill]] %s3021_s12 }
   0x6   :  { %3038 = sst [smem:[#allocation28_spill]] %s3023_s14 }
   0x7   :  { %3039 = sst [smem:[#allocation29_spill]] %s3024_s15 }
   0x8   :  { %20 = vsyncpa [#allocation5], 0 }
   0x9   :  { %22 = vsyncpa [#allocation5 + $0x1], 0 }
   0xa   :  { %23 = vsyncpa [#allocation8], 0 }
   0xb   :  { %24 = vsyncpa [#allocation11], 0 }
   0xc   :  { %25 = vsyncpa [#allocation6], 0 }
   0xd   :  { %27 = vsyncpa [#allocation6 + $0x1], 0  ;;  %s2591_s18 = smov 0   ;;  %s2593_s19 = smov 0  }
   0xe   :  { %s2595_s20 = smov 0   ;;  %s2597_s21 = smov 0  }
   0xf   :  { %s2599_s22 = smov 0   ;;  %s2601_s23 = smov 0  }
  0x10 LB: > { %3040 = sst [smem:[#allocation18_spill]] %s2474_s18  ;;  %s3025_s24 = sadd.s32 4294967295, %s2494_s23   ;;  %s2494_s23 = sphi %s2601_s23, %s33_s23   ;;  %s2490_s22 = sphi %s2599_s22, %s3067_s22   ;;  %s2486_s21 = sphi %s2597_s21, %s3066_s21   ;;  %s2482_s20 = sphi %s2595_s20, %s3070_s20   ;;  %s2478_s19 = sphi %s2593_s19, %s3069_s19   ;;  %s2474_s18 = sphi %s2591_s18, %s3068_s18  }
  0x11   : > { %3041 = sst [smem:[#allocation19_spill]] %s2490_s22  ;;  %p1973_p0 = scmp.ge.s32.totalorder %s2494_s23, 1 }
  0x12   : > { %p2625_p1 = scmp.eq.s32.totalorder %s3025_s24, 0  ;;  %p412_p2 = scmp.lt.s32.totalorder %s2494_s23, 3 }
  0x13   : > { %s2496_s27 = smov [#allocation7]   ;;  %s2497_s29 = smov [#allocation10]  }
  0x14   : > { %p2630_p3 = pnand %p1973_p0, %p412_p2  ;;  %s428_s28 = sshll.u32 %s2496_s27, 4  ;;  %s429_s28 = int_to_ptr.vmem [resolvable:$true] %s428_s28 }
  0x15   : > { %s456_s30 = sshll.u32 %s2497_s29, 4  ;;  %s2498_s17 = smov [#allocation9]   ;;  %s457_s30 = int_to_ptr.vmem [resolvable:$true] %s456_s30 }
  0x16   : > { %s3043_s26 = scalar_select %p2630_p3, 1, 0 }
  0x17   : > { %p2154_p5 = pneg %p2630_p3  ;;  %s442_s24 = sshll.u32 %s2498_s17, 4  ;;  %s2643_s24 = int_to_ptr.vmem [resolvable:$true] %s442_s24 }
  0x18   : > { %s2285_s27 = scalar_lea.vmem %s429_s28, 16  ;;  %s2292_s29 = scalar_lea.vmem %s429_s28, 32 }
  0x19   : > { %p2639_p6 = pnand %p2154_p5, %p2625_p1  ;;  %p2286_p8 = scmp.ne.s32.totalorder %s429_s28, %s2285_s27 }
  0x1a   : > { %p2293_p11 = scmp.lt.s32.totalorder %s429_s28, %s429_s28  ;;  %p2294_p12 = scmp.lt.s32.totalorder %s2292_s29, %s2285_s27 }
  0x1b   : > { %p2276_p7 = pneg %p2639_p6 }
  0x1c   : > { %p2295_p13 = por %p2294_p12, %p2293_p11 }
  0x1d   : > { %p2288_p9 = pnand %p2286_p8, %p2276_p7 }
  0x1f   : > { %p2289_p10 = pneg %p2288_p9 }
  0x21   : > { %p2296_p0 = pnand %p2295_p13, %p2289_p10 }
  0x23   : > { %2299 = shalt.err (!%p2296_p0)
}
  0x24   : > { %s3045_s4 = sld [smem:[#allocation23_spill]]  ;;  %s2311_s14 = scalar_lea.vmem %s457_s30, 16 }
  0x25   : > { %p2312_p2 = scmp.ne.s32.totalorder %s457_s30, %s2311_s14  ;;  %s2318_s12 = scalar_lea.vmem %s457_s30, 32 }
  0x26   : > { %p2319_p9 = scmp.lt.s32.totalorder %s457_s30, %s457_s30  ;;  %p2320_p4 = scmp.lt.s32.totalorder %s2318_s12, %s2311_s14 }
  0x27   : > { %p2314_p5 = pnand %p2312_p2, %p2276_p7 }
  0x28   : > { %p2321_p3 = por %p2320_p4, %p2319_p9 }
  0x29   : > { %p2315_p8 = pneg %p2314_p5 }
  0x2a   : > { %2157 = dma.hbm_to_vmem [thread:$0]  (!%p2639_p6), %s3045_s4, 16, %s429_s28, [#allocation8]  }
  0x2b   : > { %p2322_p11 = pnand %p2321_p3, %p2315_p8 }
  0x2d   : > { %2325 = shalt.err (!%p2322_p11)
}
  0x2e   : > { %s3046_s8 = sld [smem:[#allocation25_spill]]  ;;  %s2337_s15 = scalar_lea.vmem %s2643_s24, 16 }
  0x2f   : > { %p2338_p10 = scmp.ne.s32.totalorder %s2643_s24, %s2337_s15  ;;  %s2344_s12 = scalar_lea.vmem %s2643_s24, 32 }
  0x30   : > { %p2345_p3 = scmp.lt.s32.totalorder %s2643_s24, %s2643_s24  ;;  %p2346_p4 = scmp.lt.s32.totalorder %s2344_s12, %s2337_s15 }
  0x31   : > { %p2340_p12 = pnand %p2338_p10, %p2276_p7 }
  0x32   : > { %p2347_p0 = por %p2346_p4, %p2345_p3 }
  0x33   : > { %p2341_p13 = pneg %p2340_p12 }
  0x34   : > { %2163 = dma.hbm_to_vmem [thread:$0]  (!%p2639_p6), %s3046_s8, 16, %s457_s30, [#allocation11]  }
  0x35   : > { %p2348_p2 = pnand %p2347_p0, %p2341_p13 }
  0x37   : > { %2351 = shalt.err (!%p2348_p2)
}
  0x38   : > { %s3047_s6 = sld [smem:[#allocation24_spill]]  ;;  %s2499_s30 = smov [#allocation12]  }
  0x39   : > { %s467_s17 = sshll.u32 %s2499_s30, 4  ;;  %s468_s17 = int_to_ptr.vmem [resolvable:$true] %s467_s17 }
  0x3a   : > { %s2363_s27 = scalar_lea.vmem %s468_s17, 16  ;;  %s2370_s29 = scalar_lea.vmem %s468_s17, 32 }
  0x3b   : > { %p2364_p5 = scmp.ne.s32.totalorder %s468_s17, %s2363_s27  ;;  %p2371_p11 = scmp.lt.s32.totalorder %s468_s17, %s468_s17 }
  0x3c   : > { %p2372_p10 = scmp.lt.s32.totalorder %s2370_s29, %s2363_s27 }
  0x3d   : > { %p2366_p8 = pnand %p2364_p5, %p2276_p7 }
  0x3e   : > { %2160 = dma.hbm_to_vmem [thread:$0]  (!%p2639_p6), %s3047_s6, 16, %s2643_s24, [#allocation8]  }
  0x3f   : > { %p2367_p9 = pneg %p2366_p8  ;;  %p2373_p12 = por %p2372_p10, %p2371_p11 }
  0x41   : > { %p2374_p13 = pnand %p2373_p12, %p2367_p9 }
  0x43   : > { %2377 = shalt.err (!%p2374_p13)
}
  0x44   : > { %s3048_s9 = sld [smem:[#allocation26_spill]]  ;;  %s1972_s24 = sadd.s32 4294967294, %s2494_s23  }
  0x45   : > { %s45_s14 = sadd.s32 1, %s2490_s22  ;;  %s108_s16 = sadd.s32 1, %s2482_s20 }
  0x46   : > { %p47_p7 = scmp.ge.s32.totalorder %s45_s14, 2  ;;  %p115_p3 = scmp.ne.s32.totalorder %s2482_s20, %s2478_s19 }
  0x47   : > { %p116_p4 = scmp.eq.s32.totalorder %s2494_s23, 0  ;;  %p121_p2 = scmp.ne.s32.totalorder %s2478_s19, %s2474_s18 }
  0x48   : > { %s3072_s14 = smov (%p47_p7, %s45_s14), 0  ;;  %p405_p11 = scmp.eq.s32.totalorder %s1972_s24, 1 }
  0x49   : > { %3049 = sst [smem:[#allocation20_spill]] %s3072_s14  ;;  %p2693_p0 = por %p116_p4, %p115_p3 }
  0x4a   : > { %2166 = dma.hbm_to_vmem [thread:$0]  (!%p2639_p6), %s3048_s9, 16, %s468_s17, [#allocation11]  }
  0x4b   : > { %s103_s30 = ssub.s32 %s2490_s22, %s3072_s14  ;;  %s3051_s17 = sadd.s32 4294967295, %s2494_s23  }
  0x4c   : > { %p399_p6 = scmp.eq.s32.totalorder %s3051_s17, 1  ;;  %p106_p5 = scmp.eq.s32.totalorder %s103_s30, 0 }
  0x4d   : > { %p2705_p8 = por %p2625_p1, %p121_p2  ;;  %p2716_p10 = por %p405_p11, %p121_p2 }
  0x4e   : > { %p2709_p9 = por %p399_p6, %p115_p3  ;;  %p2179_p12 = scmp.lt.s32.totalorder %s2494_s23, 2 }
  0x4f   : > { %s2714_s15 = scalar_select %p106_p5, %s2482_s20, %s108_s16  }
  0x50   : > { %s3053_s29 = scalar_select %p2709_p9, 1, 0 }
  0x51   : > { %3055 = sst [smem:[#allocation22_spill]] %s2714_s15  ;;  %s510_s4 = sand.u32 1, %s2482_s20  }
  0x52   : > { %3054 = sst [smem:[#allocation21_spill]] %s3053_s29  ;;  %s1980_s17 = sshll.u32 %s2490_s22, 5 }
  0x53   : > { %s1979_s30 = sshll.u32 %s510_s4, 1  ;;  %s520_s9 = scalar_lea.hbm %s3011_s2, %s1980_s17 }
  0x54   : > { %s514_s14 = scalar_lea.vmem [#allocation4], %s1979_s30  ;;  %p2728_p13 = pnand %p2179_p12, %p2693_p0 }
  0x55   : > { %s522_s18 = sshll.u32 %s514_s14, 4  ;;  %s511_s24 = scalar_lea.sflag [#allocation5], %s510_s4  ;;  %s523_s18 = int_to_ptr.vmem [resolvable:$true] %s522_s18 }
  0x56   : > { %p2380_p7 = pneg %p2728_p13  ;;  %s2391_s16 = scalar_lea.vmem %s523_s18, 32 }
  0x57   : > { %p2392_p3 = scmp.ne.s32.totalorder %s523_s18, %s2391_s16  ;;  %s2500_s22 = smov [#allocation4]  }
  0x58   : > { %s2396_s15 = sshll.u32 %s2500_s22, 4  ;;  %s2397_s15 = int_to_ptr.vmem [resolvable:$false] %s2396_s15 }
  0x59   : > { %p2394_p4 = pnand %p2392_p3, %p2380_p7  ;;  %s2398_s6 = scalar_lea.vmem %s2397_s15, 64 }
  0x5a   : > { %p2399_p6 = scmp.lt.s32.totalorder %s523_s18, %s2397_s15  ;;  %p2400_p5 = scmp.lt.s32.totalorder %s2398_s6, %s2391_s16 }
  0x5b   : > { %p2395_p2 = pneg %p2394_p4 }
  0x5c   : > { %p2401_p11 = por %p2400_p5, %p2399_p6 }
  0x5e   : > { %p2402_p0 = pnand %p2401_p11, %p2395_p2 }
  0x60   : > { %2405 = shalt.err (!%p2402_p0)
}
  0x61   : > { %2170 = dma.hbm_to_vmem [thread:$0]  (!%p2728_p13), %s520_s9, 32, %s523_s18, %s511_s24  }
  0x62   : > { %p3058_p12 = scmp.ne.s32.totalorder %s3043_s26, 0 }
  0x63   : > { %s2739_s4 = sand.u32 (!%p3058_p12), 1, %s2478_s19  }
  0x64   : > { %531 = sbr.rel (%p3058_p12) target bundleno = 2540 (0x9ec), region = 80  ;;  %s1982_s8 = sshll.u32 (!%p3058_p12), %s2739_s4, 1 }
  0x65   : > { %s534_s22 = scalar_lea.sflag (!%p3058_p12), [#allocation5], %s2739_s4  ;;  %s2743_s14 = scalar_lea.vmem (!%p3058_p12), [#allocation4], %s1982_s8 }
  0x69   : > { %2457 = dma.done.wait (%p2705_p8), %s534_s22, 32  }
  0x6a   : > { %2459 = vsyncadd (%p2705_p8), %s534_s22, 4294967264 }
  0x6b   : > { %2461 = dma.done.wait (%p2625_p1), [#allocation8], 32  }
  0x6c   : > { %2463 = vsyncadd (%p2625_p1), [#allocation8], 4294967264 }
  0x6d   : > { %2465 = dma.done.wait (%p2625_p1), [#allocation11], 32  }
  0x6e   : > { %2467 = vsyncadd (%p2625_p1), [#allocation11], 4294967264  ;;  %p611_p13 = scmp.lt.s32.totalorder %s2486_s21, 1  ;;  %v2501_v0 = vmov 0.0   ;;  %vm2502_vm0 = vmmov 0   ;;  %v2246_v1 = vld [vmem:[%s3014_s5 + $0x8] sm:$0xff]   ;;  %v703_v24 = vlaneseq }
  0x6f   : > { %2058 = vmatprep.subr.bf16.mxu1 %v2501_v0  ;;  %2062 = vmatprep.mubr.msk.bf16.mxu1 %vm2502_vm0, %v2501_v0  ;;  %v2247_v2 = vld [vmem:[%s3014_s5] sm:$0xff]   ;;  %vm652_vm1 = vcmask 261120   ;;  %v2248_v4 = vld [vmem:[%s3012_s3 + $0x8] sm:$0xff]   ;;  %v1990_v9 = vld [vmem:[#allocation9] ss:$0 sm:$0xff]  ;;  %s2504_s26 = smov 96  }
  0x70   : > { %s612_s9 = scalar_select %p611_p13, %s2486_s21, 1  ;;  %2086 = vmatprep.subr.bf16.mxu0 %v2501_v0  ;;  %2088 = vmatprep.mubr.msk.bf16.mxu0 %vm2502_vm0, %v2501_v0  ;;  %v2249_v7 = vld [vmem:[%s3012_s3] sm:$0xff]   ;;  %v1994_v16 = vld [vmem:[#allocation7] ss:$0 sm:$0xff]  ;;  %v2505_v22 = vmov 1983009808  }
  0x71   : > { %2059 = vmatpush3.bf16.msra.mxu1 %v2246_v1  ;;  %v701_v23 = vunpack.c.l.s4 %v2505_v22  ;;  %v704_v26 = vshrl.u32 %v703_v24, 7  ;;  %v2506_v28 = vmov 1934713408   ;;  %v2507_v32 = vmov 0   ;;  %s2509_s29 = smov 16   ;;  %s2026_s27 = sshll.u32 %s2486_s21, 7 }
  0x72   : > { %s1988_s18 = sshll.u32 %s612_s9, 3  ;;  %2060 = vmatprep.subr.bf16.mxu1 %v2501_v0  ;;  %v709_v29 = vunpack.c.l.s4 %v2506_v28  ;;  %vm923_vm2 = vcmask 125952   ;;  %vm1182_vm3 = vcmask 130048   ;;  %vm1275_vm5 = vcmask 64512   ;;  %s3059_s9 = sld [smem:[#allocation27_spill]] }
  0x73   : > { %s621_s28 = scalar_lea.vmem %s3010_s1, %s1988_s18  ;;  %s617_s8 = scalar_lea.vmem %s3009_s0, %s1988_s18  ;;  %v702_v25 = vunpack.c.0.s8 %v701_v23  ;;  %vm1305_vm6 = vcmask 1043456  }
  0x74   : > { %v627_v3 = vld [vmem:[%s621_s28] sm:$0xff]  ;;  %s2503_s18 = smov 112   ;;  %v710_v31 = vunpack.c.0.s8 %v709_v29  ;;  %s1987_s28 = sshll.u32 %s2739_s4, 3 }
  0x75   : > { %v628_v5 = vpack.c.bf16 %v627_v3, %v627_v3  ;;  %2061 = vmatpush3.bf16.msra.mxu1 %v2247_v2  ;;  %v2782_v6 = vld [vmem:[%s617_s8] sm:$0xff]  ;;  %v2798_v27 = vsub.s32 %v702_v25, %v704_v26  ;;  %s3062_s24 = sld [smem:[#allocation29_spill]]  ;;  %s1812_s6 = scalar_lea.sflag [#allocation6], %s2739_s4 }
  0x76   : > { %2066 = vmatprep.subr.bf16.mxu1 %v2501_v0  ;;  %v985_v8 = vpack.c.bf16 %v2782_v6, %v2782_v6  ;;  %v2802_v34 = vsub.s32 %v710_v31, %v704_v26  ;;  %s2510_s22 = smov [#allocation13]  }
  0x78   : > { %2063 = vmatmul.mubr.msk.bf16.vlgmr.msra.gmra.mxu1 %vm652_vm1, %v628_v5 }
  0x79   : > { %2067 = vmatpush3.bf16.msra.mxu1 %v2248_v4  ;;  %2070 = vmatprep.mubr.msk.bf16.mxu1 %vm2502_vm0, %v2501_v0 }
  0x7a   : > { %2068 = vmatprep.subr.bf16.mxu1 %v2501_v0 }
  0x7b   : > { %s1824_s16 = scalar_lea.hbm %s3062_s24, %s2026_s27 }
  0x7d   : > { %2069 = vmatpush3.bf16.msra.mxu1 %v2249_v7 }
  0x7e   : > { %2074 = vmatprep.subr.bf16.mxu1 %v2501_v0 }
  0x80   : > { %2071 = vmatmul.mubr.msk.bf16.vlgmr.msra.gmra.mxu1 %vm652_vm1, %v985_v8 }
  0x81   : > { %2076 = vmatprep.mubr.msk.bf16.mxu1 %vm2502_vm0, %v2501_v0 }
 0x138   : > { %v690_v10 = vpop.f32.mrf.mxu1 }
 0x139   : > { %v691_v11 = vadd.f32 %v1990_v9, %v690_v10 }
 0x13a   : > { %v2064_v12 = vpop.f32.mrf.mxu1 }
 0x13b   : > { %v696_v13 = vpack.c.bf16 %v691_v11, %v691_v11 }
 0x13c   : > { %v693_v14 = vpop.f32.mrf.mxu1 }
 0x13d   : > { %698 = vrot.lane.b32.xlu0 %v696_v13, %s2503_s18  ;;  %v706_v30 = vrot.slane %v696_v13, %v2798_v27 }
 0x13e   : > { %v2065_v15 = vpop.f32.mrf.mxu1 }
 0x13f   : > { %v707_v33 = vcombine.high %v706_v30, %v2507_v32  ;;  %v714_v35 = vrot.slane %v706_v30, %v2802_v34 }
 0x140   : > { %v1047_v17 = vpop.f32.mrf.mxu1 }
 0x141   : > { %v1048_v18 = vadd.f32 %v1994_v16, %v1047_v17  ;;  %v721_v36 = vrot.slane %v707_v33, %v2802_v34  ;;  %v722_v39 = vcombine.high %v714_v35, %v2507_v32  ;;  %v753_v44 = vshrl.u32 %v714_v35, 16 }
 0x142   : > { %v2072_v19 = vpop.f32.mrf.mxu1 }
 0x143   : > { %1054 = vrot.lane.b32.xlu0 %v1048_v18, %s2503_s18  ;;  %v723_v40 = vcombine.high %v721_v36, %v2507_v32  ;;  %v1057_v41 = vcombine.high %v1048_v18, %v2501_v0  ;;  %v761_v48 = vshrl.u32 %v722_v39, 16  ;;  %v769_v49 = vshrl.u32 %v721_v36, 16 }
 0x144   : > { %v1050_v20 = vpop.f32.mrf.mxu1  ;;  %v1064_v51 = vrot.slane %v1048_v18, %v2798_v27 }
 0x145   : > { %v777_v50 = vshrl.u32 %v723_v40, 16  ;;  %v1071_v53 = vrot.slane %v1057_v41, %v2798_v27 }
 0x146   : > { %v2073_v21 = vpop.f32.mrf.mxu1 }
 0x147   : > { %781 = vrot.lane.b32.xlu0 %v696_v13, %s2504_s26 }
 0x1af   : > { %v2806_v37 = vpop.permute.xlu0 %698 }
 0x1b0   : > { %v731_v38 = vrot.slane %v2806_v37, %v2798_v27 }
 0x1b2   : > { %v732_v42 = vcombine.high %v731_v38, %v2507_v32  ;;  %v739_v43 = vrot.slane %v731_v38, %v2802_v34 }
 0x1b4   : > { %v746_v45 = vrot.slane %v732_v42, %v2802_v34  ;;  %v747_v46 = vcombine.high %v739_v43, %v2507_v32  ;;  %v754_v47 = vshrl.u32 %v739_v43, 16  ;;  %v751_v55 = vpack.i.b16 %v739_v43, %v714_v35 }
 0x1b5   : > { %v1055_v52 = vpop.permute.xlu0 %1054 }
 0x1b6   : > { %v748_v54 = vcombine.high %v746_v45, %v2507_v32  ;;  %v762_v56 = vshrl.u32 %v747_v46, 16  ;;  %v767_v57 = vpack.i.b16 %v746_v45, %v721_v36  ;;  %v770_v58 = vshrl.u32 %v746_v45, 16 }
 0x1b7   : > { %v1072_v59 = vcombine.high %v1055_v52, %v2501_v0  ;;  %v1079_v60 = vrot.slane %v1055_v52, %v2798_v27  ;;  %v755_v61 = vpack.i.b16 %v754_v47, %v753_v44  ;;  %v759_v62 = vpack.i.b16 %v747_v46, %v722_v39 }
 0x1b8   : > { %v775_v63 = vpack.i.b16 %v748_v54, %v723_v40  ;;  %v778_v1 = vshrl.u32 %v748_v54, 16  ;;  %v771_v2 = vpack.i.b16 %v770_v58, %v769_v49  ;;  %v867_v3 = vcombine.low %v751_v55, %v767_v57  ;;  %v1177_v55 = vld [vmem:[%s2743_s14] sm:$0x3]  ;;  %s3060_s14 = sld [smem:[#allocation28_spill]] }
 0x1b9   : > { %v1086_v4 = vrot.slane %v1072_v59, %v2798_v27  ;;  %v1087_v5 = vcombine.low %v1064_v51, %v1079_v60  ;;  %v763_v7 = vpack.i.b16 %v762_v56, %v761_v48  ;;  %v1088_v10 = vcombine.high %v1064_v51, %v1079_v60 }
 0x1ba   : > { %v779_v8 = vpack.i.b16 %v778_v1, %v777_v50  ;;  %v875_v9 = vcombine.low %v759_v62, %v775_v63  ;;  %v891_v11 = vcombine.low %v755_v61, %v771_v2  ;;  %v874_v13 = vrot.slane %v867_v3, %v2798_v27 }
 0x1bb   : > { %v1103_v12 = vcombine.low %v1071_v53, %v1086_v4  ;;  %v1104_v16 = vcombine.high %v1071_v53, %v1086_v4  ;;  %v1095_v17 = vrot.slane %v1087_v5, %v2802_v34  ;;  %v1102_v18 = vrot.slane %v1088_v10, %v2802_v34 }
 0x1bc   : > { %v882_v14 = vrot.slane %v875_v9, %v2798_v27  ;;  %v899_v15 = vcombine.low %v763_v7, %v779_v8  ;;  %v898_v21 = vrot.slane %v891_v11, %v2798_v27  ;;  %v1178_v56 = vunpack.c.0.s8 %v1177_v55 }
 0x1bd   : > { %v1111_v19 = vrot.slane %v1103_v12, %v2802_v34  ;;  %v1118_v23 = vrot.slane %v1104_v16, %v2802_v34  ;;  %v1123_v30 = vcombine.low %v1095_v17, %v1102_v18  ;;  %v1998_v31 = vcombine.high %v1095_v17, %v1102_v18  ;;  %v782_v12 = vpop.permute.xlu0 %781 }
 0x1be   : > { %v883_v20 = vcombine.low %v874_v13, %v882_v14  ;;  %v906_v22 = vrot.slane %v899_v15, %v2798_v27  ;;  %v1179_v57 = vcvt.s32.f32 %v1178_v56  ;;  %v2508_v58 = vmov -1e+09  }
 0x1bf   : > { %v1139_v26 = vcombine.low %v1111_v19, %v1118_v23  ;;  %v1999_v28 = vcombine.high %v1111_v19, %v1118_v23  ;;  %v1130_v41 = vrot.slane %v1123_v30, %v2798_v27  ;;  %v1138_v42 = vrot.slane %v1998_v31, %v2798_v27 }
 0x1c0   : > { %v890_v24 = vrot.slane %v883_v20, %v2802_v34  ;;  %v907_v25 = vcombine.low %v898_v21, %v906_v22  ;;  %vm1180_vm4 = vcmp.gt.f32.partialorder %v1179_v57, 0.0  ;;  %v792_v14 = vrot.slane %v782_v12, %v2798_v27 }
 0x1c1   : > { %v1146_v38 = vrot.slane %v1139_v26, %v2798_v27  ;;  %v1154_v39 = vrot.slane %v1999_v28, %v2798_v27  ;;  %v1155_v44 = vcombine.low %v1130_v41, %v1138_v42  ;;  %v1181_v59 = vsel %vm1180_vm4, 0.0, %v2508_v58 }
 0x1c2   : > { %v914_v29 = vrot.slane %v907_v25, %v2802_v34  ;;  %v919_v33 = vshrl.u32 %v890_v24, 16  ;;  %v793_v16 = vcombine.high %v792_v14, %v2507_v32  ;;  %v800_v18 = vrot.slane %v792_v14, %v2802_v34 }
 0x1c3   : > { %v1163_v43 = vcombine.low %v1146_v38, %v1154_v39  ;;  %v1162_v47 = vrot.slane %v1155_v44, %v2802_v34 }
 0x1c4   : > { %v917_v35 = vpack.i.b16 %v914_v29, %v890_v24  ;;  %v920_v36 = vshrl.u32 %v914_v29, 16  ;;  %v807_v21 = vrot.slane %v793_v16, %v2802_v34  ;;  %v808_v22 = vcombine.high %v800_v18, %v2507_v32 }
 0x1c5   : > { %v1170_v45 = vrot.slane %v1163_v43, %v2802_v34  ;;  %v839_v30 = vshrl.u32 %v800_v18, 16 }
 0x1c6   : > { %v921_v40 = vpack.i.b16 %v920_v36, %v919_v33  ;;  %924 = vst.msk [vmem:[#allocation2] sm:$0xf] %vm923_vm2, %v917_v35  ;;  %v809_v25 = vcombine.high %v807_v21, %v2507_v32  ;;  %v847_v33 = vshrl.u32 %v808_v22, 16  ;;  %v855_v35 = vshrl.u32 %v807_v21, 16 }
 0x1c7   : > { %v1171_v49 = vcombine.low %v1162_v47, %v1170_v45  ;;  %v1172_v53 = vcombine.high %v1162_v47, %v1170_v45 }
 0x1c8   : > { %925 = vst.msk [vmem:[#allocation2 + $0x4] sm:$0xf] %vm923_vm2, %v921_v40  ;;  %v863_v43 = vshrl.u32 %v809_v25, 16 }
 0x1c9   : > { %v1173_v51 = vpack.c.bf16 %v1171_v49, %v1171_v49  ;;  %v1174_v54 = vpack.c.bf16 %v1172_v53, %v1172_v53 }
 0x1cd   : > { %v1175_v46 = vld [vmem:[#allocation2] sm:$0xf] }
 0x1ce   : > { %v1187_v48 = vsel %vm1182_vm3, %v1175_v46, 0 }
 0x1cf   : > { %2075 = vmatpush3.bf16.xpose.msra.mxu1 %v1187_v48  ;;  %v1176_v50 = vld [vmem:[#allocation2 + $0x4] sm:$0xf] }
 0x1d0   : > { %2080 = vmatprep.subr.bf16.mxu1 %v2501_v0  ;;  %v1233_v52 = vsel %vm1182_vm3, %v1176_v50, 0 }
 0x1d6   : > { %2077 = vmatmul.mubr.msk.bf16.vlgmr.msra.gmra.mxu1 %vm1182_vm3, %v1173_v51 }
 0x1d7   : > { %2081 = vmatpush3.bf16.xpose.msra.mxu1 %v1233_v52  ;;  %2082 = vmatprep.mubr.msk.bf16.mxu1 %vm2502_vm0, %v2501_v0 }
 0x1d8   : > { %2092 = vmatprep.subr.bf16.mxu1 %v2501_v0 }
 0x1de   : > { %2083 = vmatmul.mubr.msk.bf16.vlgmr.msra.gmra.mxu1 %vm1182_vm3, %v1174_v54 }
 0x1df   : > { %2094 = vmatprep.mubr.msk.bf16.mxu1 %vm2502_vm0, %v2501_v0 }
 0x296   : > { %v1223_v60 = vpop.f32.mrf.mxu1 }
 0x297   : > { %v1224_v61 = vadd.f32 %v1223_v60, %v1181_v59 }
 0x298   : > { %v2078_v62 = vpop.f32.mrf.mxu1 }
 0x299   : > { %v1276_v63 = vsel %vm1275_vm5, %v1224_v61, -inf }
 0x29a   : > { %1277 = vmax.xlane.f32.xlu1 %v1276_v63  ;;  %v1226_v1 = vpop.f32.mrf.mxu1 }
 0x29c   : > { %v2079_v2 = vpop.f32.mrf.mxu1 }
 0x29e   : > { %v1269_v3 = vpop.f32.mrf.mxu1 }
 0x29f   : > { %v1270_v4 = vadd.f32 %v1269_v3, %v1181_v59 }
 0x2a0   : > { %v2084_v5 = vpop.f32.mrf.mxu1 }
 0x2a1   : > { %v1279_v7 = vsel %vm1275_vm5, %v1270_v4, -inf }
 0x2a2   : > { %1280 = vmax.xlane.f32.xlu1 %v1279_v7  ;;  %v1272_v8 = vpop.f32.mrf.mxu1 }
 0x2a4   : > { %v2085_v9 = vpop.f32.mrf.mxu1 }
 0x2b3   : > { %783 = vrot.lane.b32.xlu1 %v2806_v37, %s2504_s26 }
 0x323   : > { %v1278_v10 = vpop.xlane.xlu1 %1277 }
 0x324   : > { %v1282_v11 = vsub.f32 %v1224_v61, %v1278_v10 }
 0x326   : > { %v1284_v13 = vmul.f32 1.442695, %v1282_v11 }
 0x328   : > { %2262 = vpow2.f32 %v1284_v13 }
 0x32b   : > { %v1281_v15 = vpop.xlane.xlu1 %1280 }
 0x32c   : > { %v1283_v17 = vsub.f32 %v1270_v4, %v1281_v15 }
 0x32e   : > { %v1286_v19 = vmul.f32 1.442695, %v1283_v17 }
 0x32f   : > { %v784_v20 = vpop.permute.xlu1 %783 }
 0x330   : > { %2264 = vpow2.f32 %v1286_v19  ;;  %v817_v37 = vrot.slane %v784_v20, %v2798_v27 }
 0x332   : > { %v818_v23 = vcombine.high %v817_v37, %v2507_v32  ;;  %v825_v24 = vrot.slane %v817_v37, %v2802_v34 }
 0x334   : > { %v832_v26 = vrot.slane %v818_v23, %v2802_v34  ;;  %v833_v28 = vcombine.high %v825_v24, %v2507_v32  ;;  %v840_v31 = vshrl.u32 %v825_v24, 16  ;;  %v837_v39 = vpack.i.b16 %v825_v24, %v800_v18  ;;  %v2250_v18 = vld [vmem:[%s3016_s7 + $0x8] sm:$0xff]  }
 0x335   : > { %v2263_v29 = vpop.eup %2262 }
 0x336   : > { %v834_v36 = vcombine.high %v832_v26, %v2507_v32  ;;  %v848_v38 = vshrl.u32 %v833_v28, 16  ;;  %v853_v40 = vpack.i.b16 %v832_v26, %v807_v21  ;;  %v856_v41 = vshrl.u32 %v832_v26, 16 }
 0x337   : > { %v1288_v42 = vsel %vm1275_vm5, %v2263_v29, 0.0  ;;  %v845_v44 = vpack.i.b16 %v833_v28, %v808_v22  ;;  %v841_v47 = vpack.i.b16 %v840_v31, %v839_v30 }
 0x338   : > { %v861_v45 = vpack.i.b16 %v834_v36, %v809_v25  ;;  %v864_v46 = vshrl.u32 %v834_v36, 16  ;;  %1289 = vadd.xlane.f32.xlu0 %v1288_v42  ;;  %v857_v48 = vpack.i.b16 %v856_v41, %v855_v35  ;;  %v926_v49 = vcombine.low %v837_v39, %v853_v40 }
 0x339   : > { %v849_v50 = vpack.i.b16 %v848_v38, %v847_v33 }
 0x33a   : > { %v865_v51 = vpack.i.b16 %v864_v46, %v863_v43  ;;  %v934_v52 = vcombine.low %v845_v44, %v861_v45  ;;  %v950_v53 = vcombine.low %v841_v47, %v857_v48  ;;  %v933_v32 = vrot.slane %v926_v49, %v2798_v27  ;;  %v2251_v46 = vld [vmem:[%s3016_s7] sm:$0xff]  }
 0x33c   : > { %v941_v54 = vrot.slane %v934_v52, %v2798_v27  ;;  %v958_v55 = vcombine.low %v849_v50, %v865_v51  ;;  %v957_v58 = vrot.slane %v950_v53, %v2798_v27 }
 0x33d   : > { %v2265_v56 = vpop.eup %2264 }
 0x33e   : > { %v942_v57 = vcombine.low %v933_v32, %v941_v54  ;;  %v965_v59 = vrot.slane %v958_v55, %v2798_v27  ;;  %v1291_v60 = vsel %vm1275_vm5, %v2265_v56, 0.0 }
 0x33f   : > { %1292 = vadd.xlane.f32.xlu1 %v1291_v60 }
 0x340   : > { %v949_v61 = vrot.slane %v942_v57, %v2802_v34  ;;  %v966_v62 = vcombine.low %v957_v58, %v965_v59 }
 0x342   : > { %v973_v63 = vrot.slane %v966_v62, %v2802_v34  ;;  %v978_v2 = vshrl.u32 %v949_v61, 16 }
 0x344   : > { %v976_v1 = vpack.i.b16 %v973_v63, %v949_v61  ;;  %v979_v3 = vshrl.u32 %v973_v63, 16 }
 0x346   : > { %v980_v4 = vpack.i.b16 %v979_v3, %v978_v2  ;;  %982 = vst.msk [vmem:[#allocation3] sm:$0xf] %vm923_vm2, %v976_v1 }
 0x348   : > { %983 = vst.msk [vmem:[#allocation3 + $0x4] sm:$0xf] %vm923_vm2, %v980_v4 }
 0x34d   : > { %v1300_v5 = vld [vmem:[#allocation3] sm:$0xf] }
 0x34e   : > { %v1307_v7 = vsel %vm1305_vm6, %v1300_v5, 0 }
 0x34f   : > { %v1301_v8 = vld [vmem:[#allocation3 + $0x4] sm:$0xf]  ;;  %2087 = vmatpush3.bf16.msra.mxu0 %v1307_v7 }
 0x350   : > { %v1353_v9 = vsel %vm1305_vm6, %v1301_v8, 0  ;;  %2098 = vmatprep.subr.bf16.mxu0 %v2501_v0 }
 0x351   : > { %2093 = vmatpush3.bf16.msra.mxu1 %v1353_v9 }
 0x352   : > { %2106 = vmatprep.subr.bf16.mxu1 %v2501_v0 }
 0x3c1   : > { %v1290_v10 = vpop.xlane.xlu0 %1289 }
 0x3c2   : > { %2266 = vrcp.f32 %v1290_v10  ;;  %v2252_v10 = vld [vmem:[%s3020_s11 + $0x8] sm:$0xff]  }
 0x3c8   : > { %v1293_v11 = vpop.xlane.xlu1 %1292 }
 0x3c9   : > { %2268 = vrcp.f32 %v1293_v11  ;;  %v2254_v11 = vld [vmem:[%s3022_s13 + $0x38] sm:$0xff]  }
 0x3cf   : > { %v2267_v12 = vpop.eup %2266 }
 0x3d0   : > { %v1296_v13 = vmul.f32 %v2267_v12, %v2263_v29  ;;  %v2255_v12 = vld [vmem:[%s3022_s13 + $0x30] sm:$0xff]  }
 0x3d2   : > { %v1298_v14 = vpack.c.bf16 %v1296_v13, %v1296_v13  ;;  %v2256_v13 = vld [vmem:[%s3022_s13 + $0x28] sm:$0xff]  }
 0x3d4   : > { %2089 = vmatmul.mubr.msk.bf16.vlgmr.msra.gmra.mxu0 %vm1275_vm5, %v1298_v14  ;;  %v2257_v14 = vld [vmem:[%s3022_s13 + $0x20] sm:$0xff]  }
 0x3d5   : > { %2102 = vmatprep.mubr.msk.bf16.mxu0 %vm2502_vm0, %v2501_v0  ;;  %2099 = vmatpush3.bf16.msra.mxu0 %v2250_v18 }
 0x3d6   : > { %v2269_v15 = vpop.eup %2268  ;;  %2100 = vmatprep.subr.bf16.mxu0 %v2501_v0 }
 0x3d7   : > { %v1297_v16 = vmul.f32 %v2269_v15, %v2265_v56  ;;  %v2258_v15 = vld [vmem:[%s3022_s13 + $0x18] sm:$0xff]  }
 0x3d9   : > { %v1299_v17 = vpack.c.bf16 %v1297_v16, %v1297_v16  ;;  %2101 = vmatpush3.bf16.msra.mxu0 %v2251_v46  ;;  %v2259_v16 = vld [vmem:[%s3022_s13 + $0x10] sm:$0xff]  }
 0x3da   : > { %2114 = vmatprep.subr.bf16.mxu0 %v2501_v0 }
 0x3db   : > { %2095 = vmatmul.mubr.msk.bf16.vlgmr.msra.gmra.mxu1 %vm1275_vm5, %v1299_v17 }
 0x3dc   : > { %2110 = vmatprep.mubr.msk.bf16.mxu1 %vm2502_vm0, %v2501_v0  ;;  %2107 = vmatpush3.bf16.msra.mxu1 %v2252_v10 }
 0x3dd   : > { %2108 = vmatprep.subr.bf16.mxu1 %v2501_v0 }
 0x494   : > { %v1343_v19 = vpop.f32.mrf.mxu0 }
 0x495   : > { %v1395_v37 = vcombine.high %v1343_v19, %v2501_v0  ;;  %v1402_v24 = vrot.slane %v1343_v19, %v2798_v27 }
 0x496   : > { %v2090_v20 = vpop.f32.mrf.mxu0 }
 0x497   : > { %v1409_v29 = vrot.slane %v1395_v37, %v2798_v27 }
 0x498   : > { %v1346_v21 = vpop.f32.mrf.mxu0 }
 0x499   : > { %v2010_v21 = vld [vmem:[#allocation12] ss:$0 sm:$0xff] }
 0x49a   : > { %v2091_v22 = vpop.f32.mrf.mxu0 }
 0x49b   : > { %v1389_v23 = vpop.f32.mrf.mxu1  ;;  %v2011_v22 = vld [vmem:[%s3019_s10] ss:$0 sm:$0xff] }
 0x49c   : > { %v1410_v25 = vcombine.high %v1389_v23, %v2501_v0  ;;  %v1417_v26 = vrot.slane %v1389_v23, %v2798_v27 }
 0x49d   : > { %v2096_v28 = vpop.f32.mrf.mxu1 }
 0x49e   : > { %v1424_v30 = vrot.slane %v1410_v25, %v2798_v27  ;;  %v1425_v31 = vcombine.low %v1402_v24, %v1417_v26  ;;  %v1426_v33 = vcombine.high %v1402_v24, %v1417_v26  ;;  %v2260_v26 = vld [vmem:[%s3022_s13 + $0x8] sm:$0xff]   ;;  %v2261_v28 = vld [vmem:[%s3022_s13] sm:$0xff]  }
 0x49f   : > { %v1392_v35 = vpop.f32.mrf.mxu1 }
 0x4a0   : > { %v1433_v36 = vrot.slane %v1425_v31, %v2802_v34  ;;  %v1440_v38 = vrot.slane %v1426_v33, %v2802_v34  ;;  %v1441_v39 = vcombine.low %v1409_v29, %v1424_v30  ;;  %v1442_v40 = vcombine.high %v1409_v29, %v1424_v30  ;;  %v2012_v29 = vld [vmem:[%s3059_s9] ss:$0 sm:$0xff]  ;;  %s2410_s9 = sshll.u32 %s2510_s22, 4  ;;  %s2411_s9 = int_to_ptr.vmem [resolvable:$false] %s2410_s9 }
 0x4a1   : > { %v2097_v41 = vpop.f32.mrf.mxu1  ;;  %s2412_s21 = scalar_lea.vmem %s2411_s9, 256 }
 0x4a2   : > { %v1449_v42 = vrot.slane %v1441_v39, %v2802_v34  ;;  %v1456_v43 = vrot.slane %v1442_v40, %v2802_v34  ;;  %v1461_v44 = vcombine.low %v1433_v36, %v1440_v38  ;;  %v2004_v45 = vcombine.high %v1433_v36, %v1440_v38 }
 0x4a4   : > { %v1468_v47 = vrot.slane %v1461_v44, %v2798_v27  ;;  %v1476_v48 = vrot.slane %v2004_v45, %v2798_v27  ;;  %v1477_v49 = vcombine.low %v1449_v42, %v1456_v43  ;;  %v2005_v50 = vcombine.high %v1449_v42, %v1456_v43 }
 0x4a6   : > { %v1484_v51 = vrot.slane %v1477_v49, %v2798_v27  ;;  %v1492_v52 = vrot.slane %v2005_v50, %v2798_v27  ;;  %v1493_v53 = vcombine.low %v1468_v47, %v1476_v48  ;;  %v2006_v27 = vld [vmem:[#allocation10] ss:$0 sm:$0xff] }
 0x4a8   : > { %v1501_v32 = vcombine.low %v1484_v51, %v1492_v52  ;;  %v1500_v54 = vrot.slane %v1493_v53, %v2802_v34 }
 0x4aa   : > { %v1508_v55 = vrot.slane %v1501_v32, %v2802_v34 }
 0x4ac   : > { %v1510_v56 = vcombine.high %v1500_v54, %v1508_v55  ;;  %v1509_v57 = vcombine.low %v1500_v54, %v1508_v55 }
 0x4ae   : > { %1512 = vrot.lane.b32.xlu0 %v1510_v56, %s2509_s29  ;;  %s610_s29 = scalar_lea.vmem [#allocation13], %s1987_s28 }
 0x4af   : > { %s1826_s15 = sshll.u32 %s610_s29, 4  ;;  %s1827_s15 = int_to_ptr.vmem [resolvable:$true] %s1826_s15 }
 0x4b0   : > { %s2406_s8 = scalar_lea.vmem %s1827_s15, 128  ;;  %p2413_p3 = scmp.lt.s32.totalorder %s1827_s15, %s2411_s9 }
 0x4b1   : > { %p2407_p1 = scmp.ne.s32.totalorder %s1827_s15, %s2406_s8  ;;  %p2414_p4 = scmp.lt.s32.totalorder %s2412_s21, %s2406_s8 }
 0x4b3   : > { %p2408_p8 = pnand %p2407_p1, %p2709_p9  ;;  %p2415_p2 = por %p2414_p4, %p2413_p3 }
 0x4b5   : > { %p2409_p7 = pneg %p2408_p8 }
 0x4b7   : > { %p2416_p6 = pnand %p2415_p2, %p2409_p7 }
 0x520   : > { %v1513_v58 = vpop.permute.xlu0 %1512 }
 0x521   : > { %v1515_v59 = vsel %vm1182_vm3, %v1509_v57, %v1513_v58 }
 0x522   : > { %v1516_v60 = vpack.c.bf16 %v1515_v59, %v1515_v59 }
 0x524   : > { %2103 = vmatmul.mubr.msk.bf16.vlgmr.msra.gmra.mxu0 %vm652_vm1, %v1516_v60 }
 0x525   : > { %2130 = vmatprep.mubr.msk.bf16.mxu0 %vm2502_vm0, %v2501_v0  ;;  %2115 = vmatpush3.bf16.msra.mxu0 %v2254_v11 }
 0x526   : > { %2116 = vmatprep.subr.bf16.mxu0 %v2501_v0 }
 0x529   : > { %2117 = vmatpush3.bf16.msra.mxu0 %v2255_v12 }
 0x52a   : > { %2118 = vmatprep.subr.bf16.mxu0 %v2501_v0 }
 0x52d   : > { %2119 = vmatpush3.bf16.msra.mxu0 %v2256_v13 }
 0x52e   : > { %2120 = vmatprep.subr.bf16.mxu0 %v2501_v0 }
 0x531   : > { %2121 = vmatpush3.bf16.msra.mxu0 %v2257_v14 }
 0x532   : > { %2122 = vmatprep.subr.bf16.mxu0 %v2501_v0 }
 0x535   : > { %2123 = vmatpush3.bf16.msra.mxu0 %v2258_v15 }
 0x536   : > { %2124 = vmatprep.subr.bf16.mxu0 %v2501_v0 }
 0x539   : > { %2125 = vmatpush3.bf16.msra.mxu0 %v2259_v16 }
 0x53a   : > { %2126 = vmatprep.subr.bf16.mxu0 %v2501_v0 }
 0x53d   : > { %2127 = vmatpush3.bf16.msra.mxu0 %v2260_v26 }
 0x53e   : > { %2128 = vmatprep.subr.bf16.mxu0 %v2501_v0  ;;  %v2016_v0 = vld [vmem:[%s3060_s14] ss:$0 sm:$0xff] }
 0x541   : > { %2129 = vmatpush3.bf16.msra.mxu0 %v2261_v28 }
 0x5e4   : > { %v1577_v61 = vpop.f32.mrf.mxu0 }
 0x5e5   : > { %v1578_v62 = vadd.f32 %v2006_v27, %v1577_v61 }
 0x5e6   : > { %v2104_v63 = vpop.f32.mrf.mxu0 }
 0x5e7   : > { %v1597_v1 = vadd.f32 %v1578_v62, %v2782_v6  ;;  %v2253_v6 = vld [vmem:[%s3020_s11] sm:$0xff]  }
 0x5e8   : > { %v1580_v34 = vpop.f32.mrf.mxu0  ;;  %2109 = vmatpush3.bf16.msra.mxu1 %v2253_v6 }
 0x5e9   : > { %v1598_v2 = vsel %vm652_vm1, %v1597_v1, 0.0 }
 0x5ea   : > { %1599 = vadd.xlane.f32.xlu1 %v1598_v2  ;;  %v2105_v3 = vpop.f32.mrf.mxu0 }
 0x673   : > { %v1600_v4 = vpop.xlane.xlu1 %1599 }
 0x674   : > { %v1602_v5 = vmul.f32 0.03125, %v1600_v4 }
 0x676   : > { %v1603_v7 = vsub.f32 %v1597_v1, %v1602_v5 }
 0x678   : > { %v1604_v8 = vmul.f32 %v1603_v7, %v1603_v7 }
 0x67a   : > { %v1605_v9 = vsel %vm652_vm1, %v1604_v8, 0.0 }
 0x67b   : > { %1606 = vadd.xlane.f32.xlu0 %v1605_v9 }
 0x704   : > { %v1607_v17 = vpop.xlane.xlu0 %1606 }
 0x705   : > { %v1608_v18 = vmul.f32 0.03125, %v1607_v17 }
 0x707   : > { %v1609_v19 = vadd.f32 1e-05, %v1608_v18 }
 0x709   : > { %2270 = vrsqrt.f32 %v1609_v19 }
 0x716   : > { %v2271_v20 = vpop.eup %2270 }
 0x717   : > { %v1611_v37 = vmul.f32 %v2271_v20, %v1603_v7 }
 0x719   : > { %v1612_v23 = vmul.f32 %v2010_v21, %v1611_v37 }
 0x71b   : > { %v1613_v24 = vadd.f32 %v2011_v22, %v1612_v23 }
 0x71d   : > { %v1614_v25 = vpack.c.bf16 %v1613_v24, %v1613_v24 }
 0x71f   : > { %2111 = vmatmul.mubr.msk.bf16.vlgmr.msra.gmra.mxu1 %vm652_vm1, %v1614_v25 }
 0x7df   : > { %v1675_v30 = vpop.f32.mrf.mxu1 }
 0x7e0   : > { %v1676_v31 = vadd.f32 %v2012_v29, %v1675_v30 }
 0x7e1   : > { %v2112_v33 = vpop.f32.mrf.mxu1 }
 0x7e2   : > { %v1681_v35 = vmax.f32 %v1676_v31, 0.0 }
 0x7e3   : > { %v1678_v36 = vpop.f32.mrf.mxu1 }
 0x7e4   : > { %v1682_v38 = vpack.c.bf16 %v1681_v35, %v1681_v35 }
 0x7e5   : > { %v2113_v39 = vpop.f32.mrf.mxu1 }
 0x7e6   : > { %2131 = vmatmul.mubr.bf16.vlgmr.msra.gmra.mxu0 %v1682_v38 }
 0x8a6   : > { %v1788_v40 = vpop.f32.mrf.mxu0 }
 0x8a7   : > { %v1789_v41 = vadd.f32 %v2016_v0, %v1788_v40 }
 0x8a8   : > { %v2132_v42 = vpop.f32.mrf.mxu0 }
 0x8a9   : > { %v1794_v43 = vadd.f32 %v1789_v41, %v1613_v24 }
 0x8aa   : > { %v1791_v44 = vpop.f32.mrf.mxu0 }
 0x8ab   : > { %v1795_v45 = vsel %vm652_vm1, %v1794_v43, 0.0 }
 0x8ac   : > { %1796 = vadd.xlane.f32.xlu1 %v1795_v45  ;;  %v2133_v46 = vpop.f32.mrf.mxu0 }
 0x935   : > { %v1797_v47 = vpop.xlane.xlu1 %1796 }
 0x936   : > { %v1798_v48 = vmul.f32 0.03125, %v1797_v47 }
 0x938   : > { %v1799_v49 = vsub.f32 %v1794_v43, %v1798_v48 }
 0x93a   : > { %v1800_v50 = vmul.f32 %v1799_v49, %v1799_v49 }
 0x93c   : > { %v1801_v51 = vsel %vm652_vm1, %v1800_v50, 0.0 }
 0x93d   : > { %1802 = vadd.xlane.f32.xlu1 %v1801_v51 }
 0x9c6   : > { %v1803_v52 = vpop.xlane.xlu1 %1802 }
 0x9c7   : > { %v1804_v53 = vmul.f32 0.03125, %v1803_v52 }
 0x9c9   : > { %v1805_v32 = vadd.f32 1e-05, %v1804_v53 }
 0x9cb   : > { %2272 = vrsqrt.f32 %v1805_v32 }
 0x9d8   : > { %v2273_v54 = vpop.eup %2272 }
 0x9d9   : > { %v1807_v55 = vmul.f32 %v2273_v54, %v1799_v49 }
 0x9db   : > { %v1808_v56 = vmul.f32 %v2010_v21, %v1807_v55 }
 0x9dd   : > { %v1809_v57 = vadd.f32 %v2011_v22, %v1808_v56 }
 0x9df   : > { %1810 = vst.msk [vmem:[%s610_s29] sm:$0xff] %vm652_vm1, %v1809_v57 }
 0x9e0   : > { %2419 = shalt.err (!%p2416_p6)
}
 0x9e1   : > { %s2420_s18 = scalar_lea.hbm %s1824_s16, 128  ;;  %s2424_s14 = scalar_lea.hbm %s3062_s24, 256 }
 0x9e2   : > { %p2421_p5 = scmp.ne.s32.totalorder %s1824_s16, %s2420_s18  ;;  %p2425_p12 = scmp.lt.s32.totalorder %s1824_s16, %s3062_s24 }
 0x9e3   : > { %p2426_p13 = scmp.lt.s32.totalorder %s2424_s14, %s2420_s18 }
 0x9e4   : > { %p2422_p11 = pnand %p2421_p5, %p2709_p9 }
 0x9e5   : > { %p2427_p1 = por %p2426_p13, %p2425_p12 }
 0x9e6   : > { %p2423_p0 = pneg %p2422_p11 }
 0x9e8   : > { %p2428_p8 = pnand %p2427_p1, %p2423_p0 }
 0x9ea   : > { %2431 = shalt.err (!%p2428_p8)
}
 0x9eb   : > { %2152 = dma.vmem_to_hbm [thread:$0]  (%p2709_p9), %s1827_s15, 128, %s1824_s16, %s1812_s6  }
 0x9ec PF: > { %s3063_s29 = sld [smem:[#allocation18_spill]]  ;;  %p3064_p7 = scmp.ge.s32.totalorder %s2494_s23, 2 }
 0x9ee   : > { %p2172_p3 = pnand %p3064_p7, %p2716_p10 }
 0x9f0   : > { %p2173_p4 = pneg %p2172_p3 }
 0x9f2   : > { %s1838_s17 = sand.u32 1, %s3063_s29  }
 0x9f3   : > { %s1839_s30 = scalar_lea.sflag [#allocation6], %s1838_s17 }
 0x9f4   : > { %2469 = dma.done.wait (%p2173_p4), %s1839_s30, 128  }
 0x9f5   : > { %2471 = vsyncadd (%p2173_p4), %s1839_s30, 4294967168  ;;  %s33_s23 = sadd.s32 1, %s2494_s23   ;;  %s3065_s8 = sld [smem:[#allocation22_spill]] }
 0x9f6   : > { %p30_p2 = scmp.ge.s32.totalorder %s33_s23, 4   ;;  %s3066_s21 = sld [smem:[#allocation19_spill]] }
 0x9f7   : > { %s3067_s22 = sld [smem:[#allocation20_spill]]  ;;  %s3068_s18 = smov %s2478_s19 }
 0x9f8   : > { %s3069_s19 = smov %s2482_s20  ;;  %32 = sbr.rel (!%p30_p2) target bundleno = 16 (0x10), region = 151 }
 0x9fb   : > { %s3070_s20 = smov %s3065_s8 }
 0x9fd   :  { %1844 = vsyncpa [#allocation5], 1 }
 0x9fe   :  { %1846 = vsyncpa [#allocation5 + $0x1], 1 }
 0x9ff   :  { %1847 = vsyncpa [#allocation8], 1 }
 0xa00   :  { %1848 = vsyncpa [#allocation11], 1 }
 0xa01   :  { %1849 = vsyncpa [#allocation6], 1 }
 0xa02   :  { %1851 = vsyncpa [#allocation6 + $0x1], 1 }

</bundles_post_ra>
